<compile_context>
chip_gen: v7x
topology: tpu7x:2x2x1
jax: 0.10.0
libtpu: 0.0.40
codegen_flags: <defaults>
</compile_context>

<pallas_src>
import functools

import numpy as np
import jax
import jax.numpy as jnp
from jax import lax
from jax.experimental import pallas as pl
from jax.experimental.pallas import tpu as pltpu


# --------------------------------------------------------------------------- #
# Kernels (rank-agnostic: the node axis is always the second-to-last axis of
# the x block; every other axis of the block is a reduction axis).
# --------------------------------------------------------------------------- #

def _tnorm_fused_kernel(x_ref, gamma_ref, beta_ref, out_ref, stats_ref, *, eps):
    """One block holds the full (batch, time) extent: stats + normalize fused."""
    nd = len(x_ref.shape)
    node_axis = nd - 2
    red_axes = tuple(a for a in range(nd) if a != node_axis)
    count = 1
    for a in red_axes:
        count *= x_ref.shape[a]
    inv_count = 1.0 / count

    # Shifted one-pass stats: subtract a per-node pivot (first reduction element)
    # so E[xc^2] - E[xc]^2 stays numerically benign when |mean| >> std.
    pivot_idx = tuple(slice(0, 1) if a in red_axes else slice(None) for a in range(nd))
    pivot = x_ref[pivot_idx].astype(jnp.float32)

    xc = x_ref[...].astype(jnp.float32) - pivot
    s = jnp.sum(xc, axis=red_axes, keepdims=True)
    ss = jnp.sum(xc * xc, axis=red_axes, keepdims=True)
    mean_c = s * inv_count
    var = jnp.maximum(ss * inv_count - mean_c * mean_c, 0.0)   # biased variance
    mean = pivot + mean_c

    inv_std = lax.rsqrt(var + eps)                             # EUP slot (cheap)
    scale = inv_std * gamma_ref[...].astype(jnp.float32)
    shift = beta_ref[...].astype(jnp.float32) - mean * scale

    # Affine phase re-reads x_ref (VMEM loads are cheap) rather than keeping the
    # full f32 temporary live across both phases.
    out_ref[...] = (x_ref[...].astype(jnp.float32) * scale + shift).astype(out_ref.dtype)
    stats_ref[...] = jnp.concatenate([mean, var], axis=-1).reshape(stats_ref.shape)


def _tnorm_stats_kernel(x_ref, stats_ref, *, inv_count):
    """Split path, pass 1: accumulate sum / sum-of-squares across the (last,
    "arbitrary") reduction grid axis; finalize to (mean, biased var) on the last step.
    """
    # TODO(synk): the chunked path uses plain E[x^2]-mean^2 (no pivot shift).
    nd = len(x_ref.shape)
    node_axis = nd - 2
    red_axes = tuple(a for a in range(nd) if a != node_axis)

    xf = x_ref[...].astype(jnp.float32)
    s = jnp.sum(xf, axis=red_axes, keepdims=True)
    ss = jnp.sum(xf * xf, axis=red_axes, keepdims=True)
    part = jnp.concatenate([s, ss], axis=-1).reshape(stats_ref.shape)

    r = pl.program_id(2)

    @pl.when(r == 0)
    def _init():
        stats_ref[...] = jnp.zeros_like(stats_ref)

    stats_ref[...] += part

    @pl.when(r == pl.num_programs(2) - 1)
    def _finalize():
        tot = stats_ref[...]
        mean = tot[..., 0:1] * inv_count
        var = jnp.maximum(tot[..., 1:2] * inv_count - mean * mean, 0.0)
        stats_ref[...] = jnp.concatenate([mean, var], axis=-1)


def _tnorm_norm_kernel(x_ref, stats_ref, gamma_ref, beta_ref, out_ref, *, eps):
    """Normalize with precomputed per-node (mean, var): y = x*scale + shift."""
    mean = stats_ref[..., 0:1]
    var = stats_ref[..., 1:2]
    inv_std = lax.rsqrt(var + eps)
    scale = inv_std * gamma_ref[...].astype(jnp.float32)
    shift = beta_ref[...].astype(jnp.float32) - mean * scale
    out_ref[...] = (x_ref[...].astype(jnp.float32) * scale + shift).astype(out_ref.dtype)


# --------------------------------------------------------------------------- #
# BlockSpec builders.
# --------------------------------------------------------------------------- #

def _x_spec(layout, tile_n, tile_r, grid_rank, T):
    if layout == "native":                       # x is (B, C, N, T)
        bs = (tile_r, 1, tile_n, T)
        if grid_rank == 2:
            return pl.BlockSpec(bs, lambda c, n: (0, c, n, 0))
        return pl.BlockSpec(bs, lambda c, n, r: (r, c, n, 0))
    bs = (1, tile_n, tile_r)                     # x is (C, N, B*T)
    if grid_rank == 2:
        return pl.BlockSpec(bs, lambda c, n: (c, n, 0))
    return pl.BlockSpec(bs, lambda c, n, r: (c, n, r))


def _param_spec(layout, tile_n, grid_rank):
    if layout == "native":                       # gamma/beta are (1, C, N, 1)
        bs = (1, 1, tile_n, 1)
        if grid_rank == 2:
            return pl.BlockSpec(bs, lambda c, n: (0, c, n, 0))
        return pl.BlockSpec(bs, lambda c, n, r: (0, c, n, 0))
    bs = (1, tile_n, 1)                          # gamma/beta are (C, N, 1)
    if grid_rank == 2:
        return pl.BlockSpec(bs, lambda c, n: (c, n, 0))
    return pl.BlockSpec(bs, lambda c, n, r: (c, n, 0))


def _stats_spec(tile_n, grid_rank):              # stats are (C, N, 2)
    bs = (1, tile_n, 2)
    if grid_rank == 2:
        return pl.BlockSpec(bs, lambda c, n: (c, n, 0))
    return pl.BlockSpec(bs, lambda c, n, r: (c, n, 0))


# --------------------------------------------------------------------------- #
# Tiling / VMEM budgeting helpers.
# --------------------------------------------------------------------------- #

def _vmem_capacity_bytes():
    try:
        cap = getattr(pltpu.get_tpu_info(), "vmem_capacity_bytes", None)
        if cap:
            return int(cap)
    except Exception:
        pass
    return 64 << 20  # conservative lower bound (v7x per-TensorCore VMEM)


def _divisor_tiles(n, step):
    cands = [d for d in range(step, n + 1, step) if n % d == 0]
    return cands if cands else [n]   # full dim is always a legal block extent


def _pick_rows(n, other_parallel, step, per_row_bytes, budget):
    """Largest multiple-of-`step` divisor of `n` whose block footprint fits `budget`,
    preferring >=4 (else >=2) total parallel grid steps (megacore). -> (tile, fits)."""
    cands = _divisor_tiles(n, step)
    fitting = [d for d in cands if d * per_row_bytes <= budget]
    if not fitting:
        return min(cands), False
    for want in (4, 2, 1):
        ok = [d for d in fitting if other_parallel * (n // d) >= want]
        if ok:
            return max(ok), True
    return max(fitting), True


# --------------------------------------------------------------------------- #
# Forward wrapper.
# --------------------------------------------------------------------------- #

def tnorm_forward(x, gamma, beta, running_mean, running_var, *,
                  momentum=0.1, training=True, track_running_stats=True,
                  eps=1e-5, lane_min_t=128, block_budget_bytes=None):
    """x: (B, C, N, T). Returns (out, new_running_mean, new_running_var)."""
    if not track_running_stats:
        # TODO(synk): track_running_stats=False (per-sample norm over T, unbiased var)
        # is not implemented in-kernel.
        raise NotImplementedError("track_running_stats=False is not implemented")

    B, C, N, T = x.shape
    L = B * T
    out_dtype = x.dtype

    isz = x.dtype.itemsize
    sub = 8 if isz >= 4 else (16 if isz == 2 else 32)   # sublane packing for x/out
    # Per-element footprint: double-buffered input + double-buffered output (same
    # dtype) + ~2 f32 temporaries inside the kernel.
    per_elem = 4 * isz + 8

    vmem_cap = _vmem_capacity_bytes()
    budget = min(int(0.6 * vmem_cap), 48 << 20)
    if block_budget_bytes is not None:
        budget = int(block_budget_bytes)
    vmem_limit = int(min(vmem_cap - (8 << 20), max(budget, 32 << 20) + (16 << 20)))

    # Layout: read x natively (no transposes) unless T is too narrow for the lanes.
    layout = "native" if T >= lane_min_t else "lane"

    # ---- Plan selection: fused (one block holds full B*T) vs split (chunked). ----
    plan = None
    tile_n, fits = _pick_rows(N, C, sub, L * per_elem, budget)
    if fits:
        plan = {"kind": "fused", "tile_n": tile_n,
                "tile_r": (B if layout == "native" else L), "R": 1}
    elif layout == "native":
        tile_n, fits = _pick_rows(N, C, sub, T * per_elem, budget)
        if fits:
            plan = {"kind": "split", "tile_n": tile_n, "tile_r": 1, "R": B}
        else:
            layout = "lane"   # even one batch row is too big -> chunk along B*T
    if plan is None:
        # Lane-dense split: chunk the (B*T) axis in multiples of 128 lanes.
        lcands = [d for d in range(128, L + 1, 128) if L % d == 0] or [L]
        fit_l = [d for d in lcands if sub * d * per_elem <= budget]
        tile_l = max(fit_l) if fit_l else min(lcands)
        tile_n, _ = _pick_rows(N, C, sub, tile_l * per_elem, budget)
        plan = {"kind": "split", "tile_n": tile_n, "tile_r": tile_l, "R": L // tile_l}

    tile_n, tile_r, R = plan["tile_n"], plan["tile_r"], plan["R"]
    Nn = N // tile_n

    # ---- Layout-specific array views (lane path is the only one that transposes). --
    if layout == "lane":
        x_in = jnp.transpose(x, (1, 2, 0, 3)).reshape(C, N, L)
        g_in = gamma.reshape(C, N, 1).astype(jnp.float32)
        b_in = beta.reshape(C, N, 1).astype(jnp.float32)
    else:
        x_in = x
        g_in = gamma.astype(jnp.float32)
        b_in = beta.astype(jnp.float32)

    def _norm_call(stats_arr):
        return pl.pallas_call(
            functools.partial(_tnorm_norm_kernel, eps=eps),
            grid=(C, Nn, R),
            in_specs=[_x_spec(layout, tile_n, tile_r, 3, T),
                      _stats_spec(tile_n, 3),
                      _param_spec(layout, tile_n, 3),
                      _param_spec(layout, tile_n, 3)],
            out_specs=_x_spec(layout, tile_n, tile_r, 3, T),
            out_shape=jax.ShapeDtypeStruct(x_in.shape, out_dtype),
            compiler_params=pltpu.CompilerParams(
                dimension_semantics=("parallel", "parallel", "parallel"),
                vmem_limit_bytes=vmem_limit),
        )(x_in, stats_arr, g_in, b_in)

    if not training:
        # Eval mode: normalize with the running statistics (buffers unchanged).
        stats = jnp.concatenate(
            [running_mean.reshape(C, N, 1), running_var.reshape(C, N, 1)],
            axis=-1).astype(jnp.float32)
        out_in_layout = _norm_call(stats)
        new_rm, new_rv = running_mean, running_var
    else:
        if plan["kind"] == "fused":
            out_in_layout, stats = pl.pallas_call(
                functools.partial(_tnorm_fused_kernel, eps=eps),
                grid=(C, Nn),
                in_specs=[_x_spec(layout, tile_n, tile_r, 2, T),
                          _param_spec(layout, tile_n, 2),
                          _param_spec(layout, tile_n, 2)],
                out_specs=(_x_spec(layout, tile_n, tile_r, 2, T),
                           _stats_spec(tile_n, 2)),
                out_shape=(jax.ShapeDtypeStruct(x_in.shape, out_dtype),
                           jax.ShapeDtypeStruct((C, N, 2), jnp.float32)),
                compiler_params=pltpu.CompilerParams(
                    dimension_semantics=("parallel", "parallel"),
                    vmem_limit_bytes=vmem_limit),
            )(x_in, g_in, b_in)
        else:
            stats = pl.pallas_call(
                functools.partial(_tnorm_stats_kernel, inv_count=1.0 / L),
                grid=(C, Nn, R),
                in_specs=[_x_spec(layout, tile_n, tile_r, 3, T)],
                out_specs=_stats_spec(tile_n, 3),
                out_shape=jax.ShapeDtypeStruct((C, N, 2), jnp.float32),
                compiler_params=pltpu.CompilerParams(
                    dimension_semantics=("parallel", "parallel", "arbitrary"),
                    vmem_limit_bytes=vmem_limit),
            )(x_in)
            out_in_layout = _norm_call(stats)

        mean = stats[..., 0].reshape(1, C, N, 1)
        var = stats[..., 1].reshape(1, C, N, 1)
        n = B * T
        unbias = float(n) / float(n - 1) if n > 1 else 1.0   # torch's n/(n-1), guarded
        new_rm = momentum * mean + (1.0 - momentum) * running_mean
        new_rv = momentum * var * unbias + (1.0 - momentum) * running_var

    if layout == "lane":
        out = jnp.transpose(out_in_layout.reshape(C, N, B, T), (2, 0, 1, 3))
    else:
        out = out_in_layout
    return out, new_rm, new_rv


# --------------------------------------------------------------------------- #
# Self-test.
# --------------------------------------------------------------------------- #

if __name__ == "__main__":
    root = jax.random.PRNGKey(0)

    def run_case(case_id, B, C, N, T, *, dtype=jnp.float32, training=True,
                 block_budget_bytes=None, atol=1e-4):
        k = jax.random.fold_in(root, case_id)
        kx, km, kv = jax.random.split(k, 3)
        x = jax.random.normal(kx, (B, C, N, T), dtype=jnp.float32) * 1.5 + 0.7
        x = x.astype(dtype)
        gamma = jnp.full((1, C, N, 1), 1.25, dtype=jnp.float32)
        beta = jnp.full((1, C, N, 1), -0.5, dtype=jnp.float32)
        rm = jax.random.normal(km, (1, C, N, 1), dtype=jnp.float32) * 0.1
        rv = jax.random.uniform(kv, (1, C, N, 1), dtype=jnp.float32,
                                minval=0.5, maxval=1.5)

        out, new_rm, new_rv = tnorm_forward(
            x, gamma, beta, rm, rv, momentum=0.1, training=training,
            block_budget_bytes=block_budget_bytes)
        jax.block_until_ready((out, new_rm, new_rv))

        xf = np.asarray(x.astype(jnp.float32))
        if training:
            mean = xf.mean(axis=(0, 3), keepdims=True)
            var = xf.var(axis=(0, 3), keepdims=True)          # biased
            n = B * T
            exp_rm = 0.1 * mean + 0.9 * np.asarray(rm)
            unbias = n / (n - 1) if n > 1 else 1.0
            exp_rv = 0.1 * var * unbias + 0.9 * np.asarray(rv)
            np.testing.assert_allclose(np.asarray(new_rm), exp_rm, atol=atol, rtol=1e-3)
            np.testing.assert_allclose(np.asarray(new_rv), exp_rv, atol=atol, rtol=1e-3)
        else:
            mean = np.asarray(rm, np.float32)
            var = np.asarray(rv, np.float32)
            np.testing.assert_allclose(np.asarray(new_rm), np.asarray(rm))
            np.testing.assert_allclose(np.asarray(new_rv), np.asarray(rv))
        expect = ((xf - mean) / np.sqrt(var + 1e-5)) * np.asarray(gamma) + np.asarray(beta)
        np.testing.assert_allclose(np.asarray(out.astype(jnp.float32)), expect,
                                   atol=atol, rtol=1e-3)

    # 1) Primary small shape (T < 128 -> lane-dense fused fallback path).
    run_case(1, 2, 4, 16, 16)
    # 2) Native-layout fused path (no HBM transposes), f32 I/O.
    run_case(2, 2, 4, 16, 128)
    # 3) Native-layout fused path with bf16 I/O preserved end-to-end.
    run_case(3, 2, 4, 16, 128, dtype=jnp.bfloat16, atol=5e-2)
    # 4) Forced split path, native layout (reduction chunked over batch).
    run_case(4, 2, 4, 16, 128, block_budget_bytes=32 * 1024)
    # 5) Forced split path, lane-dense layout (reduction chunked over B*T).
    run_case(5, 4, 4, 16, 64, block_budget_bytes=32 * 1024)
    # 6) Eval mode (normalizes with running stats, buffers unchanged).
    run_case(6, 2, 4, 16, 128, training=False)

    print("KERNEL_OK")
</pallas_src>

<mosaic_0001>
module attributes {stable_mosaic.version = 11 : i64} {
  func.func @_tnorm_fused_kernel(%arg0: i32, %arg1: i32, %arg2: memref<1x16x32xf32, #tpu.memory_space<vmem>>, %arg3: memref<1x16x1xf32, #tpu.memory_space<vmem>>, %arg4: memref<1x16x1xf32, #tpu.memory_space<vmem>>, %arg5: memref<1x16x32xf32, #tpu.memory_space<vmem>>, %arg6: memref<1x16x2xf32, #tpu.memory_space<vmem>>) attributes {dimension_semantics = [#tpu.dimension_semantics<parallel>, #tpu.dimension_semantics<parallel>], iteration_bounds = array<i64: 4, 1>, scalar_prefetch = 0 : i64, scratch_operands = 0 : i64, tpu.core_type = #tpu.core_type<tc>, window_params = [{transform_indices = @transform_0, window_bounds = array<i64: 1, 16, 32>}, {transform_indices = @transform_1, window_bounds = array<i64: 1, 16, 1>}, {transform_indices = @transform_2, window_bounds = array<i64: 1, 16, 1>}, {transform_indices = @transform_3, window_bounds = array<i64: 1, 16, 32>}, {transform_indices = @transform_4, window_bounds = array<i64: 1, 16, 2>}]} {
    %c0 = arith.constant 0 : index
    %c0_0 = arith.constant 0 : index
    %c0_1 = arith.constant 0 : index
    %0 = vector.load %arg2[%c0, %c0_0, %c0_1] : memref<1x16x32xf32, #tpu.memory_space<vmem>>, vector<1x16x1xf32>
    %c0_2 = arith.constant 0 : index
    %c0_3 = arith.constant 0 : index
    %c0_4 = arith.constant 0 : index
    %1 = vector.load %arg2[%c0_2, %c0_3, %c0_4] : memref<1x16x32xf32, #tpu.memory_space<vmem>>, vector<1x16x32xf32>
    %2 = vector.broadcast %0 : vector<1x16x1xf32> to vector<1x16x32xf32>
    %3 = arith.subf %1, %2 : vector<1x16x32xf32>
    %cst = arith.constant dense<0.000000e+00> : vector<16xf32>
    %4 = vector.multi_reduction <add>, %3, %cst [0, 2] : vector<1x16x32xf32> to vector<16xf32>
    %5 = vector.shape_cast %4 : vector<16xf32> to vector<1x16x1xf32>
    %6 = arith.mulf %3, %3 : vector<1x16x32xf32>
    %cst_5 = arith.constant dense<0.000000e+00> : vector<16xf32>
    %7 = vector.multi_reduction <add>, %6, %cst_5 [0, 2] : vector<1x16x32xf32> to vector<16xf32>
    %8 = vector.shape_cast %7 : vector<16xf32> to vector<1x16x1xf32>
    %cst_6 = arith.constant 3.125000e-02 : f32
    %9 = vector.broadcast %cst_6 : f32 to vector<1x16x1xf32>
    %10 = arith.mulf %5, %9 : vector<1x16x1xf32>
    %cst_7 = arith.constant 3.125000e-02 : f32
    %11 = vector.broadcast %cst_7 : f32 to vector<1x16x1xf32>
    %12 = arith.mulf %8, %11 : vector<1x16x1xf32>
    %13 = arith.mulf %10, %10 : vector<1x16x1xf32>
    %14 = arith.subf %12, %13 : vector<1x16x1xf32>
    %cst_8 = arith.constant 0.000000e+00 : f32
    %15 = vector.broadcast %cst_8 : f32 to vector<1x16x1xf32>
    %16 = arith.maximumf %14, %15 : vector<1x16x1xf32>
    %17 = arith.addf %0, %10 : vector<1x16x1xf32>
    %cst_9 = arith.constant 9.99999974E-6 : f32
    %18 = vector.broadcast %cst_9 : f32 to vector<1x16x1xf32>
    %19 = arith.addf %16, %18 : vector<1x16x1xf32>
    %20 = math.rsqrt %19 : vector<1x16x1xf32>
    %c0_10 = arith.constant 0 : index
    %c0_11 = arith.constant 0 : index
    %c0_12 = arith.constant 0 : index
    %21 = vector.load %arg3[%c0_10, %c0_11, %c0_12] : memref<1x16x1xf32, #tpu.memory_space<vmem>>, vector<1x16x1xf32>
    %22 = arith.mulf %20, %21 : vector<1x16x1xf32>
    %c0_13 = arith.constant 0 : index
    %c0_14 = arith.constant 0 : index
    %c0_15 = arith.constant 0 : index
    %23 = vector.load %arg4[%c0_13, %c0_14, %c0_15] : memref<1x16x1xf32, #tpu.memory_space<vmem>>, vector<1x16x1xf32>
    %24 = arith.mulf %17, %22 : vector<1x16x1xf32>
    %25 = arith.subf %23, %24 : vector<1x16x1xf32>
    %c0_16 = arith.constant 0 : index
    %c0_17 = arith.constant 0 : index
    %c0_18 = arith.constant 0 : index
    %26 = vector.load %arg2[%c0_16, %c0_17, %c0_18] : memref<1x16x32xf32, #tpu.memory_space<vmem>>, vector<1x16x32xf32>
    %27 = vector.broadcast %22 : vector<1x16x1xf32> to vector<1x16x32xf32>
    %28 = arith.mulf %26, %27 : vector<1x16x32xf32>
    %29 = vector.broadcast %25 : vector<1x16x1xf32> to vector<1x16x32xf32>
    %30 = arith.addf %28, %29 : vector<1x16x32xf32>
    %c0_19 = arith.constant 0 : index
    %c0_20 = arith.constant 0 : index
    %c0_21 = arith.constant 0 : index
    %31 = vector.load %arg5[%c0_19, %c0_20, %c0_21] : memref<1x16x32xf32, #tpu.memory_space<vmem>>, vector<1x16x32xf32>
    tpu.vector_store %arg5[%c0_19, %c0_20, %c0_21], %30 {strides = array<i32>} : memref<1x16x32xf32, #tpu.memory_space<vmem>>, vector<1x16x32xf32>,
    %32 = tpu.concatenate %17, %16 in 2 : vector<1x16x1xf32>, vector<1x16x1xf32> -> vector<1x16x2xf32>
    %c0_22 = arith.constant 0 : index
    %c0_23 = arith.constant 0 : index
    %c0_24 = arith.constant 0 : index
    %33 = vector.load %arg6[%c0_22, %c0_23, %c0_24] : memref<1x16x2xf32, #tpu.memory_space<vmem>>, vector<1x16x2xf32>
    tpu.vector_store %arg6[%c0_22, %c0_23, %c0_24], %32 {strides = array<i32>} : memref<1x16x2xf32, #tpu.memory_space<vmem>>, vector<1x16x2xf32>,
    return
  }
  func.func @transform_0(%arg0: i32, %arg1: i32) -> (i32, i32, i32) {
    %c0_i32 = arith.constant 0 : i32
    %c0_i32_0 = arith.constant 0 : i32
    return %arg0, %arg1, %c0_i32 : i32, i32, i32
  }
  func.func @transform_1(%arg0: i32, %arg1: i32) -> (i32, i32, i32) {
    %c0_i32 = arith.constant 0 : i32
    %c0_i32_0 = arith.constant 0 : i32
    return %arg0, %arg1, %c0_i32 : i32, i32, i32
  }
  func.func @transform_2(%arg0: i32, %arg1: i32) -> (i32, i32, i32) {
    %c0_i32 = arith.constant 0 : i32
    %c0_i32_0 = arith.constant 0 : i32
    return %arg0, %arg1, %c0_i32 : i32, i32, i32
  }
  func.func @transform_3(%arg0: i32, %arg1: i32) -> (i32, i32, i32) {
    %c0_i32 = arith.constant 0 : i32
    %c0_i32_0 = arith.constant 0 : i32
    return %arg0, %arg1, %c0_i32 : i32, i32, i32
  }
  func.func @transform_4(%arg0: i32, %arg1: i32) -> (i32, i32, i32) {
    %c0_i32 = arith.constant 0 : i32
    %c0_i32_0 = arith.constant 0 : i32
    return %arg0, %arg1, %c0_i32 : i32, i32, i32
  }
}

</mosaic_0001>

<bundles_post_ra>
// kernel: tpu_custom_call.1
= control target key start
LH: loop header
LB: loop body
LE: loop exit
PB: predicated region body
PF: predicated region fallthrough
CT: control target
= control target key end

     0   :  { %10 = vsyncpa [#allocation3], 0  ;;  %s938_s0 = inlined_call_operand.vmem [shape: f32[4,16,32], index: 0, kind: input, shape index: {}]   ;;  %s939_s1 = inlined_call_operand.vmem [shape: f32[4,16,1], index: 1, kind: input, shape index: {}]   ;;  %s940_s2 = inlined_call_operand.vmem [shape: f32[4,16,1], index: 2, kind: input, shape index: {}]   ;;  %s941_s3 = inlined_call_operand.hbm [shape: f32[4,16,32], index: 3, kind: output, shape index: {0}]   ;;  %s942_s4 = inlined_call_operand.vmem [shape: f32[4,16,2], index: 4, kind: output, shape index: {1}]  }
   0x1   :  { %12 = vsyncpa [#allocation3 + $0x1], 0  ;;  %s788_s15 = smov 0   ;;  %s790_s16 = smov 0  }
   0x2   :  { %s792_s17 = smov 0   ;;  %s794_s18 = smov 0  }
   0x3   :  { %s796_s19 = smov 0   ;;  %s798_s20 = smov 0  }
   0x4 LB: > { %s591_s21 = sadd.s32 4294967295, %s757_s20   ;;  %s592_s22 = sadd.s32 4294967294, %s757_s20   ;;  %s757_s20 = sphi %s798_s20, %s18_s20   ;;  %s753_s19 = sphi %s796_s19, %s949_s19   ;;  %s749_s18 = sphi %s794_s18, %s948_s18   ;;  %s745_s17 = sphi %s792_s17, %s947_s17   ;;  %s741_s16 = sphi %s790_s16, %s946_s16   ;;  %s737_s15 = sphi %s788_s15, %s945_s15  }
   0x5   : > { %s30_s23 = sadd.s32 1, %s753_s19  ;;  %s123_s24 = sadd.s32 1, %s745_s17 }
   0x6   : > { %p32_p0 = scmp.ge.s32.totalorder %s30_s23, 4  ;;  %p133_p1 = scmp.ne.s32.totalorder %s745_s17, %s741_s16 }
   0x7   : > { %p134_p2 = scmp.eq.s32.totalorder %s591_s21, 3  ;;  %p139_p3 = scmp.ne.s32.totalorder %s741_s16, %s737_s15 }
   0x8   : > { %s951_s23 = smov (%p32_p0, %s30_s23), 0  ;;  %p140_p5 = scmp.eq.s32.totalorder %s592_s22, 3 }
   0x9   : > { %p828_p4 = por %p134_p2, %p133_p1  ;;  %s118_s26 = ssub.s32 %s753_s19, %s951_s23 }
   0xa   : > { %p595_p6 = scmp.ge.s32.totalorder %s757_s20, 1  ;;  %p121_p7 = scmp.eq.s32.totalorder %s118_s26, 0 }
   0xb   : > { %p835_p8 = por %p140_p5, %p139_p3  ;;  %p225_p9 = scmp.lt.s32.totalorder %s757_s20, 5 }
   0xc   : > { %s841_s28 = scalar_select %p121_p7, %s745_s17, %s123_s24  }
   0xd   : > { %p226_p10 = pnand %p595_p6, %p225_p9 }
   0xe   : > { %p283_p11 = scmp.lt.s32.totalorder (!%p226_p10), %s749_s18, 3  ;;  %v759_v0 = vmov (!%p226_p10), 0   ;;  %vm337_vm0 = vcmask (!%p226_p10), 261120   ;;  %vm404_vm1 = vcmask (!%p226_p10), 7168   ;;  %vm407_vm2 = vcmask (!%p226_p10), 15360   ;;  %s268_s24 = sand.u32 (!%p226_p10), 1, %s741_s16  }
   0xf   : > { %229 = sbr.rel (%p226_p10) target bundleno = 482 (0x1e2), region = 32  ;;  %673 = vset.pattern.permute.xlu0 (!%p226_p10), %v759_v0  ;;  %674 = vset.pattern.permute.xlu1 (!%p226_p10), %v759_v0  ;;  %s596_s26 = sshll.u32 (!%p226_p10), %s268_s24, 4 }
  0x10   : > { %s614_s5 = sshll.u32 (!%p226_p10), %s749_s18, 8  ;;  %s892_s9 = scalar_lea.sflag (!%p226_p10), [#allocation3], %s268_s24 }
  0x11   : > { %s889_s8 = scalar_lea.hbm (!%p226_p10), %s941_s3, %s614_s5 }
  0x16   : > { %s284_s29 = scalar_select %p283_p11, %s749_s18, 3 }
  0x18   : > { %s845_s30 = sshll.u32 %s284_s29, 4  ;;  %s270_s29 = scalar_lea.vmem [#allocation2], %s596_s26 }
  0x19   : > { %s290_s7 = scalar_lea.vmem %s938_s0, %s845_s30  ;;  %s321_s10 = scalar_lea.vmem %s942_s4, %s845_s30 }
  0x1a   : > { %v851_v1 = vld [vmem:[%s290_s7] sm:$0xff]  ;;  %v854_v2 = vld [vmem:[%s290_s7 + $0x8] sm:$0xff]  ;;  %s300_s13 = scalar_lea.vmem %s939_s1, %s845_s30  ;;  %s310_s22 = scalar_lea.vmem %s940_s2, %s845_s30 }
  0x1b   : > { %327 = vperm.xlu0 %673, %v851_v1   ;;  %v368_v33 = vld [vmem:[%s300_s13] sm:$0xff]  ;;  %v369_v36 = vld [vmem:[%s300_s13 + $0x8] sm:$0xff]  ;;  %s435_s30 = sshll.u32 %s270_s29, 4  ;;  %s884_s30 = int_to_ptr.vmem [resolvable:$true] %s435_s30 }
  0x1c   : > { %v372_v40 = vld [vmem:[%s310_s22] sm:$0xff]  ;;  %v373_v43 = vld [vmem:[%s310_s22 + $0x8] sm:$0xff]  ;;  %s679_s18 = scalar_lea.vmem %s884_s30, 256 }
  0x1d   : > { %p680_p12 = scmp.ne.s32.totalorder %s884_s30, %s679_s18 }
  0x1f   : > { %332 = vperm.xlu0 %673, %v854_v2   ;;  %p681_p13 = pnand %p680_p12, %p828_p4 }
  0x21   : > { %p682_p0 = pneg %p681_p13 }
  0x9a   : > { %v328_v3 = vpop.permute.xlu0 %327 }
  0x9b   : > { %v335_v4 = vsub.f32 %v851_v1, %v328_v3 }
  0x9d   : > { %v338_v5 = vsel %vm337_vm0, %v335_v4, 0.0  ;;  %v344_v6 = vmul.f32 %v335_v4, %v335_v4 }
  0x9e   : > { %339 = vadd.xlane.f32.xlu1 %v338_v5  ;;  %v333_v7 = vpop.permute.xlu0 %332 }
  0x9f   : > { %v336_v8 = vsub.f32 %v854_v2, %v333_v7  ;;  %v346_v9 = vsel %vm337_vm0, %v344_v6, 0.0 }
  0xa0   : > { %347 = vadd.xlane.f32.xlu0 %v346_v9 }
  0xa1   : > { %v341_v10 = vsel %vm337_vm0, %v336_v8, 0.0  ;;  %v345_v11 = vmul.f32 %v336_v8, %v336_v8 }
  0xa2   : > { %342 = vadd.xlane.f32.xlu1 %v341_v10 }
  0xa3   : > { %v349_v12 = vsel %vm337_vm0, %v345_v11, 0.0 }
  0xa6   : > { %350 = vadd.xlane.f32.xlu1 %v349_v12 }
 0x12b   : > { %v340_v13 = vpop.xlane.xlu1 %339 }
 0x12c   : > { %v352_v14 = vmul.f32 0.03125, %v340_v13 }
 0x12d   : > { %v348_v15 = vpop.xlane.xlu0 %347 }
 0x12e   : > { %v356_v16 = vmul.f32 %v352_v14, %v352_v14  ;;  %v354_v17 = vmul.f32 0.03125, %v348_v15  ;;  %v362_v21 = vadd.f32 %v352_v14, %v851_v1 }
 0x12f   : > { %v343_v18 = vpop.xlane.xlu1 %342 }
 0x130   : > { %v358_v19 = vsub.f32 %v354_v17, %v356_v16  ;;  %v353_v20 = vmul.f32 0.03125, %v343_v18 }
 0x132   : > { %v360_v22 = vmax.f32 %v358_v19, 0.0  ;;  %v357_v26 = vmul.f32 %v353_v20, %v353_v20  ;;  %v363_v29 = vadd.f32 %v353_v20, %v854_v2 }
 0x133   : > { %v351_v23 = vpop.xlane.xlu1 %350 }
 0x134   : > { %v364_v24 = vadd.f32 1e-05, %v360_v22  ;;  %v405_v25 = vsel %vm404_vm1, %v362_v21, %v360_v22  ;;  %v355_v27 = vmul.f32 0.03125, %v351_v23 }
 0x135   : > { %408 = vst.msk [vmem:[%s321_s10] sm:$0xff] %vm407_vm2, %v405_v25 }
 0x136   : > { %675 = vrsqrt.f32 %v364_v24  ;;  %v359_v28 = vsub.f32 %v355_v27, %v357_v26 }
 0x138   : > { %v361_v30 = vmax.f32 %v359_v28, 0.0 }
 0x13a   : > { %v365_v31 = vadd.f32 1e-05, %v361_v30  ;;  %v406_v32 = vsel %vm404_vm1, %v363_v29, %v361_v30 }
 0x13b   : > { %409 = vst.msk [vmem:[%s321_s10 + $0x8] sm:$0xff] %vm407_vm2, %v406_v32  ;;  %s760_s10 = smov [#allocation2]  }
 0x13c   : > { %677 = vrsqrt.f32 %v365_v31  ;;  %s683_s11 = sshll.u32 %s760_s10, 4  ;;  %s684_s11 = int_to_ptr.vmem [resolvable:$false] %s683_s11 }
 0x13d   : > { %s685_s12 = scalar_lea.vmem %s684_s11, 512  ;;  %p686_p1 = scmp.lt.s32.totalorder %s884_s30, %s684_s11 }
 0x13e   : > { %p687_p2 = scmp.lt.s32.totalorder %s685_s12, %s679_s18 }
 0x140   : > { %v676_v34 = vpop.eup %675  ;;  %p688_p3 = por %p687_p2, %p686_p1 }
 0x141   : > { %v370_v35 = vmul.f32 %v676_v34, %v368_v33 }
 0x142   : > { %p689_p5 = pnand %p688_p3, %p682_p0 }
 0x143   : > { %380 = vperm.xlu1 %674, %v370_v35   ;;  %v374_v39 = vmul.f32 %v370_v35, %v362_v21 }
 0x145   : > { %v376_v41 = vsub.f32 %v372_v40, %v374_v39 }
 0x146   : > { %v678_v37 = vpop.eup %677 }
 0x147   : > { %v371_v38 = vmul.f32 %v678_v37, %v369_v36 }
 0x149   : > { %385 = vperm.xlu1 %674, %v371_v38   ;;  %v375_v42 = vmul.f32 %v371_v38, %v363_v29 }
 0x14b   : > { %v377_v44 = vsub.f32 %v373_v43, %v375_v42 }
 0x14d   : > { %392 = vperm.xlu1 %674, %v376_v41  }
 0x151   : > { %397 = vperm.xlu1 %674, %v377_v44  }
 0x1c2   : > { %v381_v45 = vpop.permute.xlu1 %380 }
 0x1c3   : > { %v388_v47 = vmul.f32 %v381_v45, %v851_v1 }
 0x1c8   : > { %v386_v46 = vpop.permute.xlu1 %385 }
 0x1c9   : > { %v389_v50 = vmul.f32 %v386_v46, %v854_v2 }
 0x1cc   : > { %v393_v48 = vpop.permute.xlu1 %392 }
 0x1cd   : > { %v400_v49 = vadd.f32 %v393_v48, %v388_v47 }
 0x1cf   : > { %402 = vst.msk [vmem:[%s270_s29] sm:$0xff] %vm337_vm0, %v400_v49 }
 0x1d0   : > { %v398_v51 = vpop.permute.xlu1 %397 }
 0x1d1   : > { %v401_v52 = vadd.f32 %v398_v51, %v389_v50 }
 0x1d3   : > { %403 = vst.msk [vmem:[%s270_s29 + $0x8] sm:$0xff] %vm337_vm0, %v401_v52 }
 0x1d4   : > { %692 = shalt.err (!%p689_p5)
}
 0x1d5   : > { %s693_s13 = scalar_lea.hbm %s889_s8, 256  ;;  %s697_s22 = scalar_lea.hbm %s941_s3, 1024 }
 0x1d6   : > { %p694_p6 = scmp.ne.s32.totalorder %s889_s8, %s693_s13  ;;  %p698_p10 = scmp.lt.u32.totalorder %s889_s8, %s941_s3 }
 0x1d7   : > { %p699_p11 = scmp.lt.u32.totalorder %s697_s22, %s693_s13  ;;  %p701_p13 = scmp.lt.u32.totalorder %s693_s13, %s889_s8 }
 0x1d8   : > { %p695_p7 = pnand %p694_p6, %p828_p4 }
 0x1d9   : > { %p700_p12 = por %p699_p11, %p698_p10 }
 0x1da   : > { %p696_p9 = pneg %p695_p7 }
 0x1db   : > { %p702_p0 = por %p701_p13, %p700_p12 }
 0x1dd   : > { %p703_p1 = pnand %p702_p0, %p696_p9 }
 0x1df   : > { %706 = shalt.err (!%p703_p1)
}
 0x1e0   : > { %s761_s29 = smov 128   ;;  %s762_s5 = smov 8  }
 0x1e1   : > { %615 = dma.vmem_to_hbm [thread:$0]  (%p828_p4), %s884_s30, 256, %s889_s8, %s892_s9, %s761_s29, %s761_s29, %s762_s5  }
 0x1e2 PF: > { %p621_p2 = scmp.ge.s32.totalorder %s757_s20, 2  ;;  %s454_s6 = sand.u32 1, %s737_s15  }
 0x1e3   : > { %s455_s7 = scalar_lea.sflag [#allocation3], %s454_s6 }
 0x1e4   : > { %p618_p3 = pnand %p621_p2, %p835_p8 }
 0x1e6   : > { %732 = dma.done.wait (!%p618_p3), %s455_s7, 256  }
 0x1e7   : > { %734 = vsyncadd (!%p618_p3), %s455_s7, 4294967040  ;;  %s18_s20 = sadd.s32 1, %s757_s20   ;;  %s945_s15 = smov %s741_s16 }
 0x1e8   : > { %p15_p5 = scmp.ge.s32.totalorder %s18_s20, 6   ;;  %s946_s16 = smov %s745_s17 }
 0x1e9   : > { %s947_s17 = smov %s841_s28  ;;  %s948_s18 = smov %s753_s19 }
 0x1ea   : > { %s949_s19 = smov %s951_s23  ;;  %17 = sbr.rel (!%p15_p5) target bundleno = 4 (0x4), region = 85 }
 0x1f1   :  { %472 = vsyncpa [#allocation3], 1 }
 0x1f2   :  { %474 = vsyncpa [#allocation3 + $0x1], 1 }

</bundles_post_ra>
